<compile_context>
chip_gen: v5e
topology: v5e:2x2
jax: 0.10.0
libtpu: 0.0.40
codegen_flags: <defaults>
</compile_context>

<pallas_src>
import jax
import jax.numpy as jnp
from jax.experimental import pallas as pl
from jax.experimental.pallas import tpu as pltpu


def mlp_kernel(x_ref,
               w1_ref, b1_ref,
               w2_ref, b2_ref,
               w3_ref, b3_ref,
               w4_ref, b4_ref,
               o_ref):
    # MXU operand dtype comes from the weights (bf16 default, f32 for parity tests).
    cdt = w1_ref.dtype

    # In-kernel cast of the f32 input block (VPU cast -> free slot; halves the
    # HBM bytes the pipeline DMAs for x compared to a wrapper-side bf16 copy).
    x = x_ref[...].astype(cdt)

    h = jnp.dot(x, w1_ref[...], preferred_element_type=jnp.float32) + b1_ref[...]
    h = jnp.maximum(h, 0.0)
    # dropout (p=0.2) -> identity in eval mode

    h = jnp.dot(h.astype(cdt), w2_ref[...],
                preferred_element_type=jnp.float32) + b2_ref[...]
    h = jnp.maximum(h, 0.0)

    h = jnp.dot(h.astype(cdt), w3_ref[...],
                preferred_element_type=jnp.float32) + b3_ref[...]
    h = jnp.maximum(h, 0.0)

    h = jnp.dot(h.astype(cdt), w4_ref[...],
                preferred_element_type=jnp.float32) + b4_ref[...]

    o_ref[...] = h.astype(o_ref.dtype)


def _round_up(n, m):
    return pl.cdiv(n, m) * m


def mlp_forward(x_nchw, params, compute_dtype=jnp.bfloat16, tm=512):
    """Fused MLP forward.

    compute_dtype applies to the matmul operands and the kernel output dtype;
    accumulation is always f32 via preferred_element_type.
    """
    (w1, b1), (w2, b2), (w3, b3), (w4, b4) = params

    # Same semantics as torch's x.view(-1, 784); keep f32 — the kernel casts.
    x = x_nchw.reshape(-1, 784)
    B = x.shape[0]
    n_in = x.shape[1]

    # Batch tile: multiple of 8 (f32 sublane). Cap TM so the grid has >=2 steps
    # whenever the batch allows it (keeps both v7x TensorCores busy).
    half = max(_round_up(pl.cdiv(B, 2), 8), 8)
    TM = min(tm, half) if B > 8 else _round_up(B, 8)
    TM = max(TM, 8)
    Bp = _round_up(B, TM)
    if Bp != B:
        x = jnp.pad(x, ((0, Bp - B), (0, 0)))

    # Pad the final layer 10 -> 128 lanes so the output store is lane-dense.
    N_OUT = w4.shape[1]
    N_PAD = 128
    w4p = jnp.zeros((w4.shape[0], N_PAD), w4.dtype).at[:, :N_OUT].set(w4)
    b4p = jnp.zeros((1, N_PAD), b4.dtype).at[:, :N_OUT].set(b4)

    ws = [w1.astype(compute_dtype), w2.astype(compute_dtype),
          w3.astype(compute_dtype), w4p.astype(compute_dtype)]
    bs = [b1.astype(jnp.float32), b2.astype(jnp.float32),
          b3.astype(jnp.float32), b4p.astype(jnp.float32)]

    out_dtype = compute_dtype

    # Weights/biases: full block, constant index_map -> resident in VMEM across
    # all grid iterations (no re-DMA).
    def resident(a):
        return pl.BlockSpec(a.shape, lambda i: (0, 0))

    # Rough per-step VMEM estimate; only raise the scoped limit if it gets large
    # (v5e default scoped VMEM is ~16 MiB). At the default TM=512 this stays tiny.
    itemsize_x = jnp.dtype(x.dtype).itemsize
    itemsize_o = jnp.dtype(out_dtype).itemsize
    itemsize_c = jnp.dtype(compute_dtype).itemsize
    est_vmem = (2 * TM * n_in * itemsize_x          # double-buffered input block
                + 2 * TM * N_PAD * itemsize_o       # double-buffered output block
                + 2 * sum(w.size for w in ws) * itemsize_c
                + 2 * sum(b.size for b in bs) * 4
                + 4 * TM * 256 * 4)                 # intermediates headroom
    cp_kwargs = dict(dimension_semantics=("parallel",))
    if est_vmem > 14 * 1024 * 1024:
        cp_kwargs["vmem_limit_bytes"] = int(min(2 * est_vmem, 100 * 1024 * 1024))

    grid = (Bp // TM,)
    out = pl.pallas_call(
        mlp_kernel,
        out_shape=jax.ShapeDtypeStruct((Bp, N_PAD), out_dtype),
        grid=grid,
        in_specs=[
            pl.BlockSpec((TM, n_in), lambda i: (i, 0)),
            resident(ws[0]), resident(bs[0]),
            resident(ws[1]), resident(bs[1]),
            resident(ws[2]), resident(bs[2]),
            resident(ws[3]), resident(bs[3]),
        ],
        out_specs=pl.BlockSpec((TM, N_PAD), lambda i: (i, 0)),
        compiler_params=pltpu.CompilerParams(**cp_kwargs),
    )(x, ws[0], bs[0], ws[1], bs[1], ws[2], bs[2], ws[3], bs[3])

    # Consumers that can handle the padded (Bp, 128) tensor should take `out`
    # directly (cols 10..127 are exact zeros); here we return the exact logits.
    return out[:B, :N_OUT]


def init_params(key):
    """Deterministic init mimicking nn.Linear default (uniform +/- 1/sqrt(fan_in))."""
    dims = [784, 256, 128, 64, 10]
    params = []
    for i in range(4):
        fan_in, fan_out = dims[i], dims[i + 1]
        key, kw, kb = jax.random.split(key, 3)
        bound = 1.0 / (fan_in ** 0.5)
        # stored as (in, out) so the kernel does x @ W
        w = jax.random.uniform(kw, (fan_in, fan_out), jnp.float32, -bound, bound)
        b = jax.random.uniform(kb, (1, fan_out), jnp.float32, -bound, bound)
        params.append((w, b))
    return params


def mlp_reference(x_nchw, params, compute_dtype=jnp.float32):
    """Pure-JAX reference with the same operand-dtype convention as the kernel."""
    (w1, b1), (w2, b2), (w3, b3), (w4, b4) = params
    x = x_nchw.reshape(-1, 784)

    def lin(h, w, b):
        return jnp.dot(h.astype(compute_dtype), w.astype(compute_dtype),
                       preferred_element_type=jnp.float32) + b.astype(jnp.float32)

    h = jnp.maximum(lin(x, w1, b1), 0.0)
    h = jnp.maximum(lin(h, w2, b2), 0.0)
    h = jnp.maximum(lin(h, w3, b3), 0.0)
    return lin(h, w4, b4)


if __name__ == "__main__":
    key = jax.random.PRNGKey(0)
    key, kx = jax.random.split(key)
    # NCHW input like MNIST: (batch=8, channels=1, H=28, W=28)
    x = jax.random.normal(kx, (8, 1, 28, 28), jnp.float32)
    params = init_params(key)

    # 1) f32 path: strict parity with the PyTorch eval-mode forward (test-only).
    out_f32 = jax.block_until_ready(
        mlp_forward(x, params, compute_dtype=jnp.float32))
    ref_f32 = mlp_reference(x, params, compute_dtype=jnp.float32)
    assert out_f32.shape == (8, 10), out_f32.shape
    assert jnp.allclose(out_f32, ref_f32, atol=1e-4, rtol=1e-4), \
        "f32 kernel mismatch vs reference"

    # 2) Default bf16-operand / f32-accumulation serving path (MXU-native).
    out_bf16 = jax.block_until_ready(mlp_forward(x, params))
    assert out_bf16.shape == (8, 10), out_bf16.shape
    out_bf16_f32 = out_bf16.astype(jnp.float32)
    ref_bf16 = mlp_reference(x, params, compute_dtype=jnp.bfloat16)
    assert jnp.allclose(out_bf16_f32, ref_bf16, atol=5e-2, rtol=5e-2), \
        "bf16 kernel mismatch vs bf16 reference"
    assert jnp.allclose(out_bf16_f32, ref_f32, atol=1e-1, rtol=1e-1), \
        "bf16 kernel too far from f32 reference"

    print("KERNEL_OK")
</pallas_src>

<mosaic_0001>
module attributes {stable_mosaic.version = 11 : i64} {
  func.func @mlp_kernel(%arg0: i32, %arg1: memref<8x784xf32, #tpu.memory_space<vmem>>, %arg2: memref<784x256xf32, #tpu.memory_space<vmem>>, %arg3: memref<1x256xf32, #tpu.memory_space<vmem>>, %arg4: memref<256x128xf32, #tpu.memory_space<vmem>>, %arg5: memref<1x128xf32, #tpu.memory_space<vmem>>, %arg6: memref<128x64xf32, #tpu.memory_space<vmem>>, %arg7: memref<1x64xf32, #tpu.memory_space<vmem>>, %arg8: memref<64x128xf32, #tpu.memory_space<vmem>>, %arg9: memref<1x128xf32, #tpu.memory_space<vmem>>, %arg10: memref<8x128xf32, #tpu.memory_space<vmem>>) attributes {dimension_semantics = [#tpu.dimension_semantics<parallel>], iteration_bounds = array<i64: 1>, scalar_prefetch = 0 : i64, scratch_operands = 0 : i64, tpu.core_type = #tpu.core_type<tc>, window_params = [{transform_indices = @transform_0, window_bounds = array<i64: 8, 784>}, {pipeline_mode = #tpu.pipeline_mode<synchronous>, transform_indices = @transform_1, window_bounds = array<i64: 784, 256>}, {pipeline_mode = #tpu.pipeline_mode<synchronous>, transform_indices = @transform_2, window_bounds = array<i64: 1, 256>}, {pipeline_mode = #tpu.pipeline_mode<synchronous>, transform_indices = @transform_3, window_bounds = array<i64: 256, 128>}, {pipeline_mode = #tpu.pipeline_mode<synchronous>, transform_indices = @transform_4, window_bounds = array<i64: 1, 128>}, {pipeline_mode = #tpu.pipeline_mode<synchronous>, transform_indices = @transform_5, window_bounds = array<i64: 128, 64>}, {pipeline_mode = #tpu.pipeline_mode<synchronous>, transform_indices = @transform_6, window_bounds = array<i64: 1, 64>}, {pipeline_mode = #tpu.pipeline_mode<synchronous>, transform_indices = @transform_7, window_bounds = array<i64: 64, 128>}, {pipeline_mode = #tpu.pipeline_mode<synchronous>, transform_indices = @transform_8, window_bounds = array<i64: 1, 128>}, {transform_indices = @transform_9, window_bounds = array<i64: 8, 128>}]} {
    %c0 = arith.constant 0 : index
    %c0_0 = arith.constant 0 : index
    %0 = vector.load %arg1[%c0, %c0_0] : memref<8x784xf32, #tpu.memory_space<vmem>>, vector<8x784xf32>
    %c0_1 = arith.constant 0 : index
    %c0_2 = arith.constant 0 : index
    %1 = vector.load %arg2[%c0_1, %c0_2] : memref<784x256xf32, #tpu.memory_space<vmem>>, vector<784x256xf32>
    %cst = arith.constant dense<0.000000e+00> : vector<8x256xf32>
    %2 = tpu.matmul %0, %1, %cst {dimension_numbers = #tpu.dot_dimension_numbers<[1], [0], [0], [1], [0, 0, 1, 1], [], []>} : vector<8x784xf32>, vector<784x256xf32>, vector<8x256xf32> -> vector<8x256xf32>
    %c0_3 = arith.constant 0 : index
    %c0_4 = arith.constant 0 : index
    %3 = vector.load %arg3[%c0_3, %c0_4] : memref<1x256xf32, #tpu.memory_space<vmem>>, vector<1x256xf32>
    %4 = vector.broadcast %3 : vector<1x256xf32> to vector<8x256xf32>
    %5 = arith.addf %2, %4 : vector<8x256xf32>
    %cst_5 = arith.constant 0.000000e+00 : f32
    %6 = vector.broadcast %cst_5 : f32 to vector<8x256xf32>
    %7 = arith.maximumf %5, %6 : vector<8x256xf32>
    %c0_6 = arith.constant 0 : index
    %c0_7 = arith.constant 0 : index
    %8 = vector.load %arg4[%c0_6, %c0_7] : memref<256x128xf32, #tpu.memory_space<vmem>>, vector<256x128xf32>
    %cst_8 = arith.constant dense<0.000000e+00> : vector<8x128xf32>
    %9 = tpu.matmul %7, %8, %cst_8 {dimension_numbers = #tpu.dot_dimension_numbers<[1], [0], [0], [1], [0, 0, 1, 1], [], []>} : vector<8x256xf32>, vector<256x128xf32>, vector<8x128xf32> -> vector<8x128xf32>
    %c0_9 = arith.constant 0 : index
    %c0_10 = arith.constant 0 : index
    %10 = vector.load %arg5[%c0_9, %c0_10] : memref<1x128xf32, #tpu.memory_space<vmem>>, vector<1x128xf32>
    %11 = vector.broadcast %10 : vector<1x128xf32> to vector<8x128xf32>
    %12 = arith.addf %9, %11 : vector<8x128xf32>
    %cst_11 = arith.constant 0.000000e+00 : f32
    %13 = vector.broadcast %cst_11 : f32 to vector<8x128xf32>
    %14 = arith.maximumf %12, %13 : vector<8x128xf32>
    %c0_12 = arith.constant 0 : index
    %c0_13 = arith.constant 0 : index
    %15 = vector.load %arg6[%c0_12, %c0_13] : memref<128x64xf32, #tpu.memory_space<vmem>>, vector<128x64xf32>
    %cst_14 = arith.constant dense<0.000000e+00> : vector<8x64xf32>
    %16 = tpu.matmul %14, %15, %cst_14 {dimension_numbers = #tpu.dot_dimension_numbers<[1], [0], [0], [1], [0, 0, 1, 1], [], []>} : vector<8x128xf32>, vector<128x64xf32>, vector<8x64xf32> -> vector<8x64xf32>
    %c0_15 = arith.constant 0 : index
    %c0_16 = arith.constant 0 : index
    %17 = vector.load %arg7[%c0_15, %c0_16] : memref<1x64xf32, #tpu.memory_space<vmem>>, vector<1x64xf32>
    %18 = vector.broadcast %17 : vector<1x64xf32> to vector<8x64xf32>
    %19 = arith.addf %16, %18 : vector<8x64xf32>
    %cst_17 = arith.constant 0.000000e+00 : f32
    %20 = vector.broadcast %cst_17 : f32 to vector<8x64xf32>
    %21 = arith.maximumf %19, %20 : vector<8x64xf32>
    %c0_18 = arith.constant 0 : index
    %c0_19 = arith.constant 0 : index
    %22 = vector.load %arg8[%c0_18, %c0_19] : memref<64x128xf32, #tpu.memory_space<vmem>>, vector<64x128xf32>
    %cst_20 = arith.constant dense<0.000000e+00> : vector<8x128xf32>
    %23 = tpu.matmul %21, %22, %cst_20 {dimension_numbers = #tpu.dot_dimension_numbers<[1], [0], [0], [1], [0, 0, 1, 1], [], []>} : vector<8x64xf32>, vector<64x128xf32>, vector<8x128xf32> -> vector<8x128xf32>
    %c0_21 = arith.constant 0 : index
    %c0_22 = arith.constant 0 : index
    %24 = vector.load %arg9[%c0_21, %c0_22] : memref<1x128xf32, #tpu.memory_space<vmem>>, vector<1x128xf32>
    %25 = vector.broadcast %24 : vector<1x128xf32> to vector<8x128xf32>
    %26 = arith.addf %23, %25 : vector<8x128xf32>
    %c0_23 = arith.constant 0 : index
    %c0_24 = arith.constant 0 : index
    %27 = vector.load %arg10[%c0_23, %c0_24] : memref<8x128xf32, #tpu.memory_space<vmem>>, vector<8x128xf32>
    tpu.vector_store %arg10[%c0_23, %c0_24], %26 {strides = array<i32>} : memref<8x128xf32, #tpu.memory_space<vmem>>, vector<8x128xf32>,
    return
  }
  func.func @transform_0(%arg0: i32) -> (i32, i32) {
    %c0_i32 = arith.constant 0 : i32
    %c0_i32_0 = arith.constant 0 : i32
    return %arg0, %c0_i32 : i32, i32
  }
  func.func @transform_1(%arg0: i32) -> (i32, i32) {
    %c0_i32 = arith.constant 0 : i32
    %c0_i32_0 = arith.constant 0 : i32
    %c0_i32_1 = arith.constant 0 : i32
    return %c0_i32, %c0_i32_0 : i32, i32
  }
  func.func @transform_2(%arg0: i32) -> (i32, i32) {
    %c0_i32 = arith.constant 0 : i32
    %c0_i32_0 = arith.constant 0 : i32
    %c0_i32_1 = arith.constant 0 : i32
    return %c0_i32, %c0_i32_0 : i32, i32
  }
  func.func @transform_3(%arg0: i32) -> (i32, i32) {
    %c0_i32 = arith.constant 0 : i32
    %c0_i32_0 = arith.constant 0 : i32
    %c0_i32_1 = arith.constant 0 : i32
    return %c0_i32, %c0_i32_0 : i32, i32
  }
  func.func @transform_4(%arg0: i32) -> (i32, i32) {
    %c0_i32 = arith.constant 0 : i32
    %c0_i32_0 = arith.constant 0 : i32
    %c0_i32_1 = arith.constant 0 : i32
    return %c0_i32, %c0_i32_0 : i32, i32
  }
  func.func @transform_5(%arg0: i32) -> (i32, i32) {
    %c0_i32 = arith.constant 0 : i32
    %c0_i32_0 = arith.constant 0 : i32
    %c0_i32_1 = arith.constant 0 : i32
    return %c0_i32, %c0_i32_0 : i32, i32
  }
  func.func @transform_6(%arg0: i32) -> (i32, i32) {
    %c0_i32 = arith.constant 0 : i32
    %c0_i32_0 = arith.constant 0 : i32
    %c0_i32_1 = arith.constant 0 : i32
    return %c0_i32, %c0_i32_0 : i32, i32
  }
  func.func @transform_7(%arg0: i32) -> (i32, i32) {
    %c0_i32 = arith.constant 0 : i32
    %c0_i32_0 = arith.constant 0 : i32
    %c0_i32_1 = arith.constant 0 : i32
    return %c0_i32, %c0_i32_0 : i32, i32
  }
  func.func @transform_8(%arg0: i32) -> (i32, i32) {
    %c0_i32 = arith.constant 0 : i32
    %c0_i32_0 = arith.constant 0 : i32
    %c0_i32_1 = arith.constant 0 : i32
    return %c0_i32, %c0_i32_0 : i32, i32
  }
  func.func @transform_9(%arg0: i32) -> (i32, i32) {
    %c0_i32 = arith.constant 0 : i32
    %c0_i32_0 = arith.constant 0 : i32
    return %arg0, %c0_i32 : i32, i32
  }
}

</mosaic_0001>

<bundles_post_ra>
// kernel: tpu_custom_call.1
= control target key start
LH: loop header
LB: loop body
LE: loop exit
PB: predicated region body
PF: predicated region fallthrough
CT: control target
= control target key end

     0   :  { %14 = vsyncpa [#allocation3], 0  ;;  %s1025_s0 = inlined_call_operand.vmem [shape: f32[8,784], index: 0, kind: input, shape index: {}]   ;;  %s1026_s1 = inlined_call_operand.hbm [shape: f32[784,256], index: 1, kind: input, shape index: {}]   ;;  %s1027_s2 = inlined_call_operand.vmem [shape: f32[1,256], index: 2, kind: input, shape index: {}]   ;;  %s1028_s3 = inlined_call_operand.hbm [shape: f32[256,128], index: 3, kind: input, shape index: {}]   ;;  %s1029_s4 = inlined_call_operand.vmem [shape: f32[1,128], index: 4, kind: input, shape index: {}]   ;;  %s1030_s5 = inlined_call_operand.vmem [shape: f32[128,64], index: 5, kind: input, shape index: {}]   ;;  %s1031_s6 = inlined_call_operand.vmem [shape: f32[1,64], index: 6, kind: input, shape index: {}]   ;;  %s1032_s7 = inlined_call_operand.vmem [shape: f32[64,128], index: 7, kind: input, shape index: {}]   ;;  %s1033_s8 = inlined_call_operand.vmem [shape: f32[1,128], index: 8, kind: input, shape index: {}]   ;;  %s1034_s9 = inlined_call_operand.hbm [shape: f32[8,128], index: 9, kind: output, shape index: {}]  }
   0x1   :  { %15 = vsyncpa [#allocation6], 0 }
   0x2   :  { %16 = vsyncpa [#allocation4], 0  ;;  %s23_s11 = sshll.u32 %s1026_s1, 4  ;;  %s824_s12 = smov [#allocation2]   ;;  %s24_s11 = int_to_ptr.hbm [resolvable:$true] %s23_s11 }
   0x3   :  { %s25_s13 = sshll.u32 %s824_s12, 4  ;;  %s38_s16 = sshll.u32 %s1028_s3, 4  ;;  %s26_s13 = int_to_ptr.vmem [resolvable:$true] %s25_s13  ;;  %s39_s16 = int_to_ptr.hbm [resolvable:$true] %s38_s16 }
   0x4   :  { %s825_s17 = smov 256   ;;  %s826_s18 = smov 16  }
   0x5   :  { %31 = dma.hbm_to_vmem [thread:$0]  %s24_s11, 25088, %s26_s13, [#allocation3], %s825_s17, %s825_s17, %s826_s18  }
   0x6   :  { %s827_s19 = smov [#allocation5]   ;;  %s828_s21 = smov 128  }
   0x7   :  { %s40_s20 = sshll.u32 %s827_s19, 4  ;;  %s829_s22 = smov 8   ;;  %s41_s20 = int_to_ptr.vmem [resolvable:$true] %s40_s20 }
   0x8   :  { %46 = dma.hbm_to_vmem [thread:$0]  %s39_s16, 4096, %s41_s20, [#allocation6], %s828_s21, %s828_s21, %s829_s22  }
   0x9   :  { %818 = dma.done.wait [#allocation3], 25088  }
   0xa   :  { %819 = vsyncadd [#allocation3], 4294942208 }
   0xb   :  { %820 = dma.done.wait [#allocation6], 4096  }
   0xc   :  { %821 = vsyncadd [#allocation6], 4294963200  ;;  %v102_v0 = vld [vmem:[#allocation2 + $0xf0] sm:$0xff]  ;;  %v100_v3 = vld [vmem:[#allocation2 + $0xe0] sm:$0xff]  ;;  %vm274_vm0 = vcmask 130048   ;;  %vm690_vm1 = vcmask 523264  }
   0xd   :  { %v166_v1 = vld [vmem:[#allocation2 + $0x2f0] sm:$0xff]  ;;  %278 = vmatpush.msra.mxu0 %v102_v0  ;;  %v164_v5 = vld [vmem:[#allocation2 + $0x2e0] sm:$0xff]  ;;  %s830_s16 = smov [#allocation7]  }
   0xe   :  { %v198_v2 = vld [vmem:[#allocation2 + $0x3f0] sm:$0xff]  ;;  %318 = vmatpush.msra.mxu2 %v166_v1  ;;  %v196_v6 = vld [vmem:[#allocation2 + $0x3e0] sm:$0xff]  ;;  %s720_s17 = sshll.u32 %s830_s16, 4  ;;  %s721_s17 = int_to_ptr.vmem [resolvable:$true] %s720_s17 }
   0xf   :  { %v134_v4 = vld [vmem:[#allocation2 + $0x1f0] sm:$0xff]  ;;  %338 = vmatpush.msra.mxu3 %v198_v2  ;;  %v132_v8 = vld [vmem:[#allocation2 + $0x1e0] sm:$0xff]  ;;  %279 = vmatpush.msra.mxu0 %v100_v3  ;;  %v103_v2 = vld [vmem:[#allocation2 + $0xf8] sm:$0xff] }
  0x10   :  { %298 = vmatpush.msra.mxu1 %v134_v4  ;;  %v98_v7 = vld [vmem:[#allocation2 + $0xd0] sm:$0xff]  ;;  %319 = vmatpush.msra.mxu2 %v164_v5  ;;  %v96_v11 = vld [vmem:[#allocation2 + $0xc0] sm:$0xff] }
  0x11   :  { %v162_v9 = vld [vmem:[#allocation2 + $0x2d0] sm:$0xff]  ;;  %339 = vmatpush.msra.mxu3 %v196_v6  ;;  %v160_v13 = vld [vmem:[#allocation2 + $0x2c0] sm:$0xff]  ;;  %280 = vmatpush.msra.mxu0 %v98_v7  ;;  %v101_v7 = vld [vmem:[#allocation2 + $0xe8] sm:$0xff] }
  0x12   :  { %v194_v10 = vld [vmem:[#allocation2 + $0x3d0] sm:$0xff]  ;;  %299 = vmatpush.msra.mxu1 %v132_v8  ;;  %320 = vmatpush.msra.mxu2 %v162_v9  ;;  %v192_v14 = vld [vmem:[#allocation2 + $0x3c0] sm:$0xff]  ;;  %v135_v8 = vld [vmem:[#allocation2 + $0x1f8] sm:$0xff] }
  0x13   :  { %v130_v12 = vld [vmem:[#allocation2 + $0x1d0] sm:$0xff]  ;;  %v128_v15 = vld [vmem:[#allocation2 + $0x1c0] sm:$0xff]  ;;  %340 = vmatpush.msra.mxu3 %v194_v10  ;;  %281 = vmatpush.msra.mxu0 %v96_v11 }
  0x14   :  { %300 = vmatpush.msra.mxu1 %v130_v12  ;;  %v94_v16 = vld [vmem:[#allocation2 + $0xb0] sm:$0xff]  ;;  %321 = vmatpush.msra.mxu2 %v160_v13  ;;  %v92_v20 = vld [vmem:[#allocation2 + $0xa0] sm:$0xff]  ;;  %v901_v12 = vld [vmem:[%s1025_s0 + $0x18] sm:$0xff] }
  0x15   :  { %v158_v17 = vld [vmem:[#allocation2 + $0x2b0] sm:$0xff]  ;;  %341 = vmatpush.msra.mxu3 %v192_v14  ;;  %v156_v21 = vld [vmem:[#allocation2 + $0x2a0] sm:$0xff]  ;;  %282 = vmatpush.msra.mxu0 %v94_v16  ;;  %v133_v13 = vld [vmem:[#allocation2 + $0x1e8] sm:$0xff] }
  0x16   :  { %v190_v18 = vld [vmem:[#allocation2 + $0x3b0] sm:$0xff]  ;;  %301 = vmatpush.msra.mxu1 %v128_v15  ;;  %322 = vmatpush.msra.mxu2 %v158_v17  ;;  %v188_v22 = vld [vmem:[#allocation2 + $0x3a0] sm:$0xff]  ;;  %v99_v14 = vld [vmem:[#allocation2 + $0xd8] sm:$0xff] }
  0x17   :  { %v126_v19 = vld [vmem:[#allocation2 + $0x1b0] sm:$0xff]  ;;  %v124_v23 = vld [vmem:[#allocation2 + $0x1a0] sm:$0xff]  ;;  %342 = vmatpush.msra.mxu3 %v190_v18  ;;  %283 = vmatpush.msra.mxu0 %v92_v20  ;;  %v131_v17 = vld [vmem:[#allocation2 + $0x1d8] sm:$0xff] }
  0x18   :  { %302 = vmatpush.msra.mxu1 %v126_v19  ;;  %v90_v24 = vld [vmem:[#allocation2 + $0x90] sm:$0xff]  ;;  %323 = vmatpush.msra.mxu2 %v156_v21  ;;  %v88_v28 = vld [vmem:[#allocation2 + $0x80] sm:$0xff]  ;;  %v908_v18 = vld [vmem:[%s1025_s0 + $0x8] sm:$0xff] }
  0x19   :  { %v154_v25 = vld [vmem:[#allocation2 + $0x290] sm:$0xff]  ;;  %343 = vmatpush.msra.mxu3 %v188_v22  ;;  %v152_v29 = vld [vmem:[#allocation2 + $0x280] sm:$0xff]  ;;  %284 = vmatpush.msra.mxu0 %v90_v24  ;;  %v97_v19 = vld [vmem:[#allocation2 + $0xc8] sm:$0xff] }
  0x1a   :  { %v186_v26 = vld [vmem:[#allocation2 + $0x390] sm:$0xff]  ;;  %303 = vmatpush.msra.mxu1 %v124_v23  ;;  %324 = vmatpush.msra.mxu2 %v154_v25  ;;  %v184_v30 = vld [vmem:[#allocation2 + $0x380] sm:$0xff]  ;;  %v95_v22 = vld [vmem:[#allocation2 + $0xb8] sm:$0xff] }
  0x1b   :  { %v122_v27 = vld [vmem:[#allocation2 + $0x190] sm:$0xff]  ;;  %v120_v31 = vld [vmem:[#allocation2 + $0x180] sm:$0xff]  ;;  %344 = vmatpush.msra.mxu3 %v186_v26  ;;  %285 = vmatpush.msra.mxu0 %v88_v28  ;;  %v129_v23 = vld [vmem:[#allocation2 + $0x1c8] sm:$0xff] }
  0x1c   :  { %304 = vmatpush.msra.mxu1 %v122_v27  ;;  %v86_v32 = vld [vmem:[#allocation2 + $0x70] sm:$0xff]  ;;  %325 = vmatpush.msra.mxu2 %v152_v29  ;;  %v84_v36 = vld [vmem:[#allocation2 + $0x60] sm:$0xff]  ;;  %v93_v26 = vld [vmem:[#allocation2 + $0xa8] sm:$0xff] }
  0x1d   :  { %v150_v33 = vld [vmem:[#allocation2 + $0x270] sm:$0xff]  ;;  %345 = vmatpush.msra.mxu3 %v184_v30  ;;  %v148_v37 = vld [vmem:[#allocation2 + $0x260] sm:$0xff]  ;;  %286 = vmatpush.msra.mxu0 %v86_v32  ;;  %v127_v27 = vld [vmem:[#allocation2 + $0x1b8] sm:$0xff] }
  0x1e   :  { %v182_v34 = vld [vmem:[#allocation2 + $0x370] sm:$0xff]  ;;  %305 = vmatpush.msra.mxu1 %v120_v31  ;;  %326 = vmatpush.msra.mxu2 %v150_v33  ;;  %v180_v38 = vld [vmem:[#allocation2 + $0x360] sm:$0xff]  ;;  %v91_v30 = vld [vmem:[#allocation2 + $0x98] sm:$0xff] }
  0x1f   :  { %v118_v35 = vld [vmem:[#allocation2 + $0x170] sm:$0xff]  ;;  %v116_v39 = vld [vmem:[#allocation2 + $0x160] sm:$0xff]  ;;  %346 = vmatpush.msra.mxu3 %v182_v34  ;;  %287 = vmatpush.msra.mxu0 %v84_v36  ;;  %v125_v31 = vld [vmem:[#allocation2 + $0x1a8] sm:$0xff] }
  0x20   :  { %306 = vmatpush.msra.mxu1 %v118_v35  ;;  %v82_v40 = vld [vmem:[#allocation2 + $0x50] sm:$0xff]  ;;  %327 = vmatpush.msra.mxu2 %v148_v37  ;;  %v80_v44 = vld [vmem:[#allocation2 + $0x40] sm:$0xff]  ;;  %v89_v34 = vld [vmem:[#allocation2 + $0x88] sm:$0xff] }
  0x21   :  { %v146_v41 = vld [vmem:[#allocation2 + $0x250] sm:$0xff]  ;;  %347 = vmatpush.msra.mxu3 %v180_v38  ;;  %v144_v45 = vld [vmem:[#allocation2 + $0x240] sm:$0xff]  ;;  %288 = vmatpush.msra.mxu0 %v82_v40  ;;  %v123_v35 = vld [vmem:[#allocation2 + $0x198] sm:$0xff] }
  0x22   :  { %v178_v42 = vld [vmem:[#allocation2 + $0x350] sm:$0xff]  ;;  %307 = vmatpush.msra.mxu1 %v116_v39  ;;  %328 = vmatpush.msra.mxu2 %v146_v41  ;;  %v176_v46 = vld [vmem:[#allocation2 + $0x340] sm:$0xff]  ;;  %v87_v38 = vld [vmem:[#allocation2 + $0x78] sm:$0xff] }
  0x23   :  { %v114_v43 = vld [vmem:[#allocation2 + $0x150] sm:$0xff]  ;;  %v112_v47 = vld [vmem:[#allocation2 + $0x140] sm:$0xff]  ;;  %348 = vmatpush.msra.mxu3 %v178_v42  ;;  %289 = vmatpush.msra.mxu0 %v80_v44  ;;  %v121_v39 = vld [vmem:[#allocation2 + $0x188] sm:$0xff] }
  0x24   :  { %308 = vmatpush.msra.mxu1 %v114_v43  ;;  %v78_v48 = vld [vmem:[#allocation2 + $0x30] sm:$0xff]  ;;  %329 = vmatpush.msra.mxu2 %v144_v45  ;;  %v76_v52 = vld [vmem:[#allocation2 + $0x20] sm:$0xff]  ;;  %v85_v42 = vld [vmem:[#allocation2 + $0x68] sm:$0xff] }
  0x25   :  { %v142_v49 = vld [vmem:[#allocation2 + $0x230] sm:$0xff]  ;;  %349 = vmatpush.msra.mxu3 %v176_v46  ;;  %v140_v53 = vld [vmem:[#allocation2 + $0x220] sm:$0xff]  ;;  %290 = vmatpush.msra.mxu0 %v78_v48  ;;  %v119_v43 = vld [vmem:[#allocation2 + $0x178] sm:$0xff] }
  0x26   :  { %v174_v50 = vld [vmem:[#allocation2 + $0x330] sm:$0xff]  ;;  %309 = vmatpush.msra.mxu1 %v112_v47  ;;  %330 = vmatpush.msra.mxu2 %v142_v49  ;;  %v172_v54 = vld [vmem:[#allocation2 + $0x320] sm:$0xff]  ;;  %v83_v46 = vld [vmem:[#allocation2 + $0x58] sm:$0xff] }
  0x27   :  { %v110_v51 = vld [vmem:[#allocation2 + $0x130] sm:$0xff]  ;;  %v108_v55 = vld [vmem:[#allocation2 + $0x120] sm:$0xff]  ;;  %350 = vmatpush.msra.mxu3 %v174_v50  ;;  %291 = vmatpush.msra.mxu0 %v76_v52  ;;  %v117_v47 = vld [vmem:[#allocation2 + $0x168] sm:$0xff] }
  0x28   :  { %310 = vmatpush.msra.mxu1 %v110_v51  ;;  %v74_v56 = vld [vmem:[#allocation2 + $0x10] sm:$0xff]  ;;  %331 = vmatpush.msra.mxu2 %v140_v53  ;;  %v72_v60 = vld [vmem:[#allocation2] sm:$0xff]  ;;  %v81_v50 = vld [vmem:[#allocation2 + $0x48] sm:$0xff] }
  0x29   :  { %v138_v57 = vld [vmem:[#allocation2 + $0x210] sm:$0xff]  ;;  %351 = vmatpush.msra.mxu3 %v172_v54  ;;  %v136_v61 = vld [vmem:[#allocation2 + $0x200] sm:$0xff]  ;;  %292 = vmatpush.msra.mxu0 %v74_v56  ;;  %v115_v51 = vld [vmem:[#allocation2 + $0x158] sm:$0xff] }
  0x2a   :  { %v170_v58 = vld [vmem:[#allocation2 + $0x310] sm:$0xff]  ;;  %311 = vmatpush.msra.mxu1 %v108_v55  ;;  %332 = vmatpush.msra.mxu2 %v138_v57  ;;  %v168_v62 = vld [vmem:[#allocation2 + $0x300] sm:$0xff]  ;;  %v79_v54 = vld [vmem:[#allocation2 + $0x38] sm:$0xff] }
  0x2b   :  { %v106_v59 = vld [vmem:[#allocation2 + $0x110] sm:$0xff]  ;;  %352 = vmatpush.msra.mxu3 %v170_v58  ;;  %v104_v1 = vld [vmem:[#allocation2 + $0x100] sm:$0xff]  ;;  %293 = vmatpush.msra.mxu0 %v72_v60  ;;  %v113_v55 = vld [vmem:[#allocation2 + $0x148] sm:$0xff] }
  0x2c   :  { %v230_v63 = vld [vmem:[#allocation2 + $0x4f0] sm:$0xff]  ;;  %312 = vmatpush.msra.mxu1 %v106_v59  ;;  %333 = vmatpush.msra.mxu2 %v136_v61  ;;  %v228_v3 = vld [vmem:[#allocation2 + $0x4e0] sm:$0xff]  ;;  %v77_v58 = vld [vmem:[#allocation2 + $0x28] sm:$0xff] }
  0x2d   :  { %v266_v0 = vld [vmem:[#allocation2 + $0x610] sm:$0xff]  ;;  %353 = vmatpush.msra.mxu3 %v168_v62  ;;  %358 = vmatpush.msrb.mxu0 %v230_v63  ;;  %v264_v5 = vld [vmem:[#allocation2 + $0x600] sm:$0xff]  ;;  %v111_v59 = vld [vmem:[#allocation2 + $0x138] sm:$0xff] }
  0x2e   :  { %v262_v4 = vld [vmem:[#allocation2 + $0x5f0] sm:$0xff]  ;;  %412 = vmatpush.msrb.mxu2 %v266_v0  ;;  %313 = vmatpush.msra.mxu1 %v104_v1  ;;  %v260_v10 = vld [vmem:[#allocation2 + $0x5e0] sm:$0xff]  ;;  %v75_v63 = vld [vmem:[#allocation2 + $0x18] sm:$0xff] }
  0x2f   :  { %v890_v6 = vld [vmem:[%s1025_s0 + $0x10] sm:$0xff]  ;;  %418 = vmatpush.msrb.mxu3 %v103_v2  ;;  %359 = vmatpush.msrb.mxu0 %v228_v3  ;;  %v895_v11 = vld [vmem:[%s1025_s0] sm:$0xff]  ;;  %v109_v0 = vld [vmem:[#allocation2 + $0x128] sm:$0xff] }
  0x30   :  { %v226_v9 = vld [vmem:[#allocation2 + $0x4d0] sm:$0xff]  ;;  %378 = vmatpush.msrb.mxu1 %v262_v4  ;;  %413 = vmatpush.msrb.mxu2 %v264_v5  ;;  %v224_v15 = vld [vmem:[#allocation2 + $0x4c0] sm:$0xff]  ;;  %v73_v4 = vld [vmem:[#allocation2 + $0x8] sm:$0xff] }
  0x31   :  { %334 = vmatmul.f32.vlgmr.msra.gmra.mxu2 %v890_v6  ;;  %419 = vmatpush.msrb.mxu3 %v101_v7  ;;  %v258_v16 = vld [vmem:[#allocation2 + $0x5d0] sm:$0xff]  ;;  %v256_v21 = vld [vmem:[#allocation2 + $0x5c0] sm:$0xff]  ;;  %v107_v5 = vld [vmem:[#allocation2 + $0x118] sm:$0xff] }
  0x32   :  { %438 = vmatpush.msra.mxu2 %v135_v8  ;;  %360 = vmatpush.msrb.mxu0 %v226_v9  ;;  %v222_v20 = vld [vmem:[#allocation2 + $0x4b0] sm:$0xff]  ;;  %v220_v24 = vld [vmem:[#allocation2 + $0x4a0] sm:$0xff]  ;;  %v231_v8 = vld [vmem:[#allocation2 + $0x4f8] sm:$0xff] }
  0x33   :  { %379 = vmatpush.msrb.mxu1 %v260_v10  ;;  %294 = vmatmul.f32.vlgmr.msra.gmra.mxu0 %v895_v11  ;;  %v254_v25 = vld [vmem:[#allocation2 + $0x5b0] sm:$0xff]  ;;  %v252_v29 = vld [vmem:[#allocation2 + $0x5a0] sm:$0xff]  ;;  %v927_v9 = vld [vmem:[%s1025_s0 + $0x28] sm:$0xff] }
  0x34   :  { %354 = vmatmul.f32.vlgmr.msra.gmra.mxu3 %v901_v12  ;;  %439 = vmatpush.msra.mxu2 %v133_v13  ;;  %v218_v28 = vld [vmem:[#allocation2 + $0x490] sm:$0xff]  ;;  %v216_v32 = vld [vmem:[#allocation2 + $0x480] sm:$0xff]  ;;  %v105_v10 = vld [vmem:[#allocation2 + $0x108] sm:$0xff] }
  0x35   :  { %420 = vmatpush.msrb.mxu3 %v99_v14  ;;  %361 = vmatpush.msrb.mxu0 %v224_v15  ;;  %v250_v33 = vld [vmem:[#allocation2 + $0x590] sm:$0xff]  ;;  %v248_v37 = vld [vmem:[#allocation2 + $0x580] sm:$0xff]  ;;  %v167_v13 = vld [vmem:[#allocation2 + $0x2f8] sm:$0xff] }
  0x36   :  { %380 = vmatpush.msrb.mxu1 %v258_v16  ;;  %440 = vmatpush.msra.mxu2 %v131_v17  ;;  %v214_v36 = vld [vmem:[#allocation2 + $0x470] sm:$0xff]  ;;  %v212_v40 = vld [vmem:[#allocation2 + $0x460] sm:$0xff]  ;;  %v229_v14 = vld [vmem:[#allocation2 + $0x4e8] sm:$0xff] }
  0x37   :  { %314 = vmatmul.f32.vlgmr.msra.gmra.mxu1 %v908_v18  ;;  %421 = vmatpush.msrb.mxu3 %v97_v19  ;;  %v246_v41 = vld [vmem:[#allocation2 + $0x570] sm:$0xff]  ;;  %v244_v45 = vld [vmem:[#allocation2 + $0x560] sm:$0xff]  ;;  %v263_v15 = vld [vmem:[#allocation2 + $0x5f8] sm:$0xff] }
  0x38   :  { %362 = vmatpush.msrb.mxu0 %v222_v20  ;;  %381 = vmatpush.msrb.mxu1 %v256_v21  ;;  %v210_v44 = vld [vmem:[#allocation2 + $0x450] sm:$0xff]  ;;  %v208_v48 = vld [vmem:[#allocation2 + $0x440] sm:$0xff]  ;;  %v199_v16 = vld [vmem:[#allocation2 + $0x3f8] sm:$0xff] }
  0x39   :  { %422 = vmatpush.msrb.mxu3 %v95_v22  ;;  %441 = vmatpush.msra.mxu2 %v129_v23  ;;  %v242_v49 = vld [vmem:[#allocation2 + $0x550] sm:$0xff]  ;;  %v240_v53 = vld [vmem:[#allocation2 + $0x540] sm:$0xff]  ;;  %v165_v17 = vld [vmem:[#allocation2 + $0x2e8] sm:$0xff] }
  0x3a   :  { %363 = vmatpush.msrb.mxu0 %v220_v24  ;;  %382 = vmatpush.msrb.mxu1 %v254_v25  ;;  %v206_v52 = vld [vmem:[#allocation2 + $0x430] sm:$0xff]  ;;  %v204_v56 = vld [vmem:[#allocation2 + $0x420] sm:$0xff]  ;;  %v227_v19 = vld [vmem:[#allocation2 + $0x4d8] sm:$0xff] }
  0x3b   :  { %423 = vmatpush.msrb.mxu3 %v93_v26  ;;  %442 = vmatpush.msra.mxu2 %v127_v27  ;;  %v238_v57 = vld [vmem:[#allocation2 + $0x530] sm:$0xff]  ;;  %v236_v61 = vld [vmem:[#allocation2 + $0x520] sm:$0xff]  ;;  %v261_v20 = vld [vmem:[#allocation2 + $0x5e8] sm:$0xff] }
  0x3c   :  { %364 = vmatpush.msrb.mxu0 %v218_v28  ;;  %383 = vmatpush.msrb.mxu1 %v252_v29  ;;  %v202_v60 = vld [vmem:[#allocation2 + $0x410] sm:$0xff]  ;;  %v200_v1 = vld [vmem:[#allocation2 + $0x400] sm:$0xff]  ;;  %v197_v21 = vld [vmem:[#allocation2 + $0x3e8] sm:$0xff] }
  0x3d   :  { %424 = vmatpush.msrb.mxu3 %v91_v30  ;;  %443 = vmatpush.msra.mxu2 %v125_v31  ;;  %v914_v62 = vld [vmem:[%s1025_s0 + $0x30] sm:$0xff]  ;;  %v919_v3 = vld [vmem:[%s1025_s0 + $0x20] sm:$0xff]  ;;  %v163_v22 = vld [vmem:[#allocation2 + $0x2d8] sm:$0xff] }
  0x3e   :  { %365 = vmatpush.msrb.mxu0 %v216_v32  ;;  %384 = vmatpush.msrb.mxu1 %v250_v33  ;;  %v234_v2 = vld [vmem:[#allocation2 + $0x510] sm:$0xff]  ;;  %v232_v7 = vld [vmem:[#allocation2 + $0x500] sm:$0xff]  ;;  %v225_v23 = vld [vmem:[#allocation2 + $0x4c8] sm:$0xff] }
  0x3f   :  { %425 = vmatpush.msrb.mxu3 %v89_v34  ;;  %444 = vmatpush.msra.mxu2 %v123_v35  ;;  %v259_v24 = vld [vmem:[#allocation2 + $0x5d8] sm:$0xff]  ;;  %v161_v26 = vld [vmem:[#allocation2 + $0x2c8] sm:$0xff] }
  0x40   :  { %366 = vmatpush.msrb.mxu0 %v214_v36  ;;  %385 = vmatpush.msrb.mxu1 %v248_v37  ;;  %v195_v25 = vld [vmem:[#allocation2 + $0x3d8] sm:$0xff]  ;;  %v257_v28 = vld [vmem:[#allocation2 + $0x5c8] sm:$0xff] }
  0x41   :  { %426 = vmatpush.msrb.mxu3 %v87_v38  ;;  %445 = vmatpush.msra.mxu2 %v121_v39  ;;  %v223_v27 = vld [vmem:[#allocation2 + $0x4b8] sm:$0xff]  ;;  %v193_v29 = vld [vmem:[#allocation2 + $0x3c8] sm:$0xff] }
  0x42   :  { %367 = vmatpush.msrb.mxu0 %v212_v40  ;;  %386 = vmatpush.msrb.mxu1 %v246_v41  ;;  %v159_v30 = vld [vmem:[#allocation2 + $0x2b8] sm:$0xff]  ;;  %v221_v31 = vld [vmem:[#allocation2 + $0x4a8] sm:$0xff] }
  0x43   :  { %427 = vmatpush.msrb.mxu3 %v85_v42  ;;  %446 = vmatpush.msra.mxu2 %v119_v43  ;;  %v255_v32 = vld [vmem:[#allocation2 + $0x5b8] sm:$0xff]  ;;  %v157_v34 = vld [vmem:[#allocation2 + $0x2a8] sm:$0xff] }
  0x44   :  { %368 = vmatpush.msrb.mxu0 %v210_v44  ;;  %387 = vmatpush.msrb.mxu1 %v244_v45  ;;  %v191_v33 = vld [vmem:[#allocation2 + $0x3b8] sm:$0xff]  ;;  %v253_v36 = vld [vmem:[#allocation2 + $0x5a8] sm:$0xff] }
  0x45   :  { %428 = vmatpush.msrb.mxu3 %v83_v46  ;;  %447 = vmatpush.msra.mxu2 %v117_v47  ;;  %v219_v35 = vld [vmem:[#allocation2 + $0x498] sm:$0xff]  ;;  %v189_v37 = vld [vmem:[#allocation2 + $0x3a8] sm:$0xff] }
  0x46   :  { %369 = vmatpush.msrb.mxu0 %v208_v48  ;;  %388 = vmatpush.msrb.mxu1 %v242_v49  ;;  %v155_v38 = vld [vmem:[#allocation2 + $0x298] sm:$0xff]  ;;  %v217_v39 = vld [vmem:[#allocation2 + $0x488] sm:$0xff] }
  0x47   :  { %429 = vmatpush.msrb.mxu3 %v81_v50  ;;  %448 = vmatpush.msra.mxu2 %v115_v51  ;;  %v251_v40 = vld [vmem:[#allocation2 + $0x598] sm:$0xff]  ;;  %v153_v42 = vld [vmem:[#allocation2 + $0x288] sm:$0xff] }
  0x48   :  { %370 = vmatpush.msrb.mxu0 %v206_v52  ;;  %389 = vmatpush.msrb.mxu1 %v240_v53  ;;  %v187_v41 = vld [vmem:[#allocation2 + $0x398] sm:$0xff]  ;;  %v249_v44 = vld [vmem:[#allocation2 + $0x588] sm:$0xff] }
  0x49   :  { %430 = vmatpush.msrb.mxu3 %v79_v54  ;;  %449 = vmatpush.msra.mxu2 %v113_v55  ;;  %v215_v43 = vld [vmem:[#allocation2 + $0x478] sm:$0xff]  ;;  %v185_v45 = vld [vmem:[#allocation2 + $0x388] sm:$0xff] }
  0x4a   :  { %371 = vmatpush.msrb.mxu0 %v204_v56  ;;  %390 = vmatpush.msrb.mxu1 %v238_v57  ;;  %v151_v46 = vld [vmem:[#allocation2 + $0x278] sm:$0xff]  ;;  %v213_v47 = vld [vmem:[#allocation2 + $0x468] sm:$0xff] }
  0x4b   :  { %431 = vmatpush.msrb.mxu3 %v77_v58  ;;  %450 = vmatpush.msra.mxu2 %v111_v59  ;;  %v247_v48 = vld [vmem:[#allocation2 + $0x578] sm:$0xff]  ;;  %v149_v50 = vld [vmem:[#allocation2 + $0x268] sm:$0xff] }
  0x4c   :  { %372 = vmatpush.msrb.mxu0 %v202_v60  ;;  %391 = vmatpush.msrb.mxu1 %v236_v61  ;;  %v183_v49 = vld [vmem:[#allocation2 + $0x378] sm:$0xff]  ;;  %v245_v52 = vld [vmem:[#allocation2 + $0x568] sm:$0xff] }
  0x4d   :  { %733 = vmatmul.msk.f32.vlgmr.msrb.gmra.mxu2 %vm274_vm0, %v914_v62  ;;  %432 = vmatpush.msrb.mxu3 %v75_v63  ;;  %v211_v51 = vld [vmem:[#allocation2 + $0x458] sm:$0xff]  ;;  %v181_v53 = vld [vmem:[#allocation2 + $0x368] sm:$0xff] }
  0x4e   :  { %451 = vmatpush.msra.mxu2 %v109_v0  ;;  %373 = vmatpush.msrb.mxu0 %v200_v1  ;;  %v147_v54 = vld [vmem:[#allocation2 + $0x258] sm:$0xff]  ;;  %v209_v55 = vld [vmem:[#allocation2 + $0x448] sm:$0xff] }
  0x4f   :  { %392 = vmatpush.msrb.mxu1 %v234_v2  ;;  %374 = vmatmul.f32.vlgmr.msrb.gmra.mxu0 %v919_v3  ;;  %v243_v56 = vld [vmem:[#allocation2 + $0x558] sm:$0xff]  ;;  %v145_v57 = vld [vmem:[#allocation2 + $0x248] sm:$0xff] }
  0x50   :  { %433 = vmatpush.msrb.mxu3 %v73_v4  ;;  %452 = vmatpush.msra.mxu2 %v107_v5  ;;  %v179_v58 = vld [vmem:[#allocation2 + $0x358] sm:$0xff]  ;;  %v241_v60 = vld [vmem:[#allocation2 + $0x548] sm:$0xff] }
  0x51   :  { %393 = vmatpush.msrb.mxu1 %v232_v7  ;;  %458 = vmatpush.msra.mxu0 %v167_v13  ;;  %v207_v59 = vld [vmem:[#allocation2 + $0x438] sm:$0xff]  ;;  %v177_v63 = vld [vmem:[#allocation2 + $0x348] sm:$0xff] }
  0x52   :  { %498 = vmatpush.msra.mxu3 %v231_v8  ;;  %394 = vmatmul.f32.vlgmr.msrb.gmra.mxu1 %v927_v9  ;;  %v143_v61 = vld [vmem:[#allocation2 + $0x238] sm:$0xff]  ;;  %v205_v0 = vld [vmem:[#allocation2 + $0x428] sm:$0xff] }
  0x53   :  { %453 = vmatpush.msra.mxu2 %v105_v10  ;;  %478 = vmatpush.msra.mxu1 %v199_v16  ;;  %v239_v1 = vld [vmem:[#allocation2 + $0x538] sm:$0xff]  ;;  %v141_v2 = vld [vmem:[#allocation2 + $0x228] sm:$0xff] }
  0x54   :  { %499 = vmatpush.msra.mxu3 %v229_v14  ;;  %459 = vmatpush.msra.mxu0 %v165_v17  ;;  %v175_v4 = vld [vmem:[#allocation2 + $0x338] sm:$0xff]  ;;  %v237_v7 = vld [vmem:[#allocation2 + $0x528] sm:$0xff] }
  0x55   :  { %518 = vmatpush.msrb.mxu2 %v263_v15  ;;  %479 = vmatpush.msra.mxu1 %v197_v21  ;;  %v203_v5 = vld [vmem:[#allocation2 + $0x418] sm:$0xff]  ;;  %v201_v10 = vld [vmem:[#allocation2 + $0x408] sm:$0xff] }
  0x56   :  { %500 = vmatpush.msra.mxu3 %v227_v19  ;;  %460 = vmatpush.msra.mxu0 %v163_v22  ;;  %v139_v8 = vld [vmem:[#allocation2 + $0x218] sm:$0xff]  ;;  %v137_v14 = vld [vmem:[#allocation2 + $0x208] sm:$0xff]  ;;  %v572_v22 = vld [vmem:[#allocation5 + $0x60] sm:$0xff] }
  0x57   :  { %519 = vmatpush.msrb.mxu2 %v261_v20  ;;  %480 = vmatpush.msra.mxu1 %v195_v25  ;;  %v235_v13 = vld [vmem:[#allocation2 + $0x518] sm:$0xff]  ;;  %v169_v16 = vld [vmem:[#allocation2 + $0x308] sm:$0xff]  ;;  %v566_v25 = vld [vmem:[#allocation5 + $0x30] sm:$0xff] }
  0x58   :  { %501 = vmatpush.msra.mxu3 %v225_v23  ;;  %461 = vmatpush.msra.mxu0 %v161_v26  ;;  %v171_v15 = vld [vmem:[#allocation2 + $0x318] sm:$0xff]  ;;  %v265_v19 = vld [vmem:[#allocation2 + $0x608] sm:$0xff]  ;;  %v564_v26 = vld [vmem:[#allocation5 + $0x20] sm:$0xff] }
  0x59   :  { %520 = vmatpush.msrb.mxu2 %v259_v24  ;;  %481 = vmatpush.msra.mxu1 %v193_v29  ;;  %v267_v17 = vld [vmem:[#allocation2 + $0x618] sm:$0xff]  ;;  %v573_v21 = vld [vmem:[#allocation5 + $0x68] sm:$0xff]  ;;  %v568_v24 = vld [vmem:[#allocation5 + $0x40] sm:$0xff] }
  0x5a   :  { %502 = vmatpush.msra.mxu3 %v223_v27  ;;  %462 = vmatpush.msra.mxu0 %v159_v30  ;;  %v575_v20 = vld [vmem:[#allocation5 + $0x78] sm:$0xff]  ;;  %v561_v29 = vld [vmem:[#allocation5 + $0x8] sm:$0xff]  ;;  %v560_v30 = vld [vmem:[#allocation5] sm:$0xff] }
  0x5b   :  { %521 = vmatpush.msrb.mxu2 %v257_v28  ;;  %482 = vmatpush.msra.mxu1 %v191_v33  ;;  %v571_v23 = vld [vmem:[#allocation5 + $0x58] sm:$0xff]  ;;  %v562_v28 = vld [vmem:[#allocation5 + $0x10] sm:$0xff]  ;;  %v268_v33 = vld [vmem:[%s1027_s2] sm:$0x3] }
  0x5c   :  { %503 = vmatpush.msra.mxu3 %v221_v31  ;;  %463 = vmatpush.msra.mxu0 %v157_v34  ;;  %v563_v27 = vld [vmem:[#allocation5 + $0x18] sm:$0xff]  ;;  %v589_v34 = vld [vmem:[#allocation5 + $0xe8] sm:$0xff] }
  0x5d   :  { %522 = vmatpush.msrb.mxu2 %v255_v32  ;;  %483 = vmatpush.msra.mxu1 %v189_v37  ;;  %v591_v31 = vld [vmem:[#allocation5 + $0xf8] sm:$0xff]  ;;  %v590_v32 = vld [vmem:[#allocation5 + $0xf0] sm:$0xff] }
  0x5e   :  { %504 = vmatpush.msra.mxu3 %v219_v35  ;;  %464 = vmatpush.msra.mxu0 %v155_v38  ;;  %v588_v35 = vld [vmem:[#allocation5 + $0xe0] sm:$0xff] }
  0x5f   :  { %523 = vmatpush.msrb.mxu2 %v253_v36  ;;  %484 = vmatpush.msra.mxu1 %v187_v41  ;;  %v270_v36 = vperm.slane %v268_v33, 0 }
  0x60   :  { %505 = vmatpush.msra.mxu3 %v217_v39  ;;  %465 = vmatpush.msra.mxu0 %v153_v42 }
  0x61   :  { %524 = vmatpush.msrb.mxu2 %v251_v40  ;;  %485 = vmatpush.msra.mxu1 %v185_v45 }
  0x62   :  { %506 = vmatpush.msra.mxu3 %v215_v43  ;;  %466 = vmatpush.msra.mxu0 %v151_v46  ;;  %v587_v46 = vld [vmem:[#allocation5 + $0xd8] sm:$0xff] }
  0x63   :  { %525 = vmatpush.msrb.mxu2 %v249_v44  ;;  %486 = vmatpush.msra.mxu1 %v183_v49 }
  0x64   :  { %507 = vmatpush.msra.mxu3 %v213_v47  ;;  %467 = vmatpush.msra.mxu0 %v149_v50 }
  0x65   :  { %526 = vmatpush.msrb.mxu2 %v247_v48  ;;  %487 = vmatpush.msra.mxu1 %v181_v53  ;;  %v586_v48 = vld [vmem:[#allocation5 + $0xd0] sm:$0xff] }
  0x66   :  { %508 = vmatpush.msra.mxu3 %v211_v51  ;;  %468 = vmatpush.msra.mxu0 %v147_v54  ;;  %v584_v54 = vld [vmem:[#allocation5 + $0xc0] sm:$0xff] }
  0x67   :  { %527 = vmatpush.msrb.mxu2 %v245_v52  ;;  %434 = vmatmul.f32.vlgmr.msrb.gmra.mxu3 %v895_v11  ;;  %v173_v11 = vld [vmem:[#allocation2 + $0x328] sm:$0xff] }
  0x68   :  { %509 = vmatpush.msra.mxu3 %v209_v55  ;;  %469 = vmatpush.msra.mxu0 %v145_v57  ;;  %v585_v52 = vld [vmem:[#allocation5 + $0xc8] sm:$0xff]  ;;  %v582_v57 = vld [vmem:[#allocation5 + $0xb0] sm:$0xff] }
  0x69   :  { %528 = vmatpush.msrb.mxu2 %v243_v56  ;;  %488 = vmatpush.msra.mxu1 %v179_v58  ;;  %v583_v56 = vld [vmem:[#allocation5 + $0xb8] sm:$0xff]  ;;  %v581_v58 = vld [vmem:[#allocation5 + $0xa8] sm:$0xff] }
  0x6a   :  { %510 = vmatpush.msra.mxu3 %v207_v59  ;;  %454 = vmatmul.f32.vlgmr.msra.gmra.mxu2 %v908_v18  ;;  %v233_v18 = vld [vmem:[#allocation2 + $0x508] sm:$0xff]  ;;  %v580_v59 = vld [vmem:[#allocation5 + $0xa0] sm:$0xff] }
  0x6b   :  { %529 = vmatpush.msrb.mxu2 %v241_v60  ;;  %470 = vmatpush.msra.mxu0 %v143_v61  ;;  %v579_v60 = vld [vmem:[#allocation5 + $0x98] sm:$0xff]  ;;  %v578_v61 = vld [vmem:[#allocation5 + $0x90] sm:$0xff] }
  0x6c   :  { %489 = vmatpush.msra.mxu1 %v177_v63  ;;  %511 = vmatpush.msra.mxu3 %v205_v0  ;;  %v577_v63 = vld [vmem:[#allocation5 + $0x88] sm:$0xff]  ;;  %v576_v0 = vld [vmem:[#allocation5 + $0x80] sm:$0xff] }
  0x6d   :  { %530 = vmatpush.msrb.mxu2 %v239_v1  ;;  %471 = vmatpush.msra.mxu0 %v141_v2  ;;  %v271_v1 = vperm.slane %v268_v33, 1  ;;  %v684_v33 = vld [vmem:[%s1032_s7 + $0x30] sm:$0xff] }
  0x6e   :  { %490 = vmatpush.msra.mxu1 %v175_v4  ;;  %512 = vmatpush.msra.mxu3 %v203_v5 }
  0x6f   :  { %531 = vmatpush.msrb.mxu2 %v237_v7  ;;  %472 = vmatpush.msra.mxu0 %v139_v8 }
  0x70   :  { %491 = vmatpush.msra.mxu1 %v173_v11  ;;  %513 = vmatpush.msra.mxu3 %v201_v10 }
  0x71   :  { %532 = vmatpush.msrb.mxu2 %v235_v13  ;;  %514 = vmatmul.f32.vlgmr.msra.gmra.mxu3 %v919_v3  ;;  %v574_v3 = vld [vmem:[#allocation5 + $0x70] sm:$0xff] }
  0x72   :  { %473 = vmatpush.msra.mxu0 %v137_v14  ;;  %492 = vmatpush.msra.mxu1 %v171_v15 }
  0x73   :  { %533 = vmatpush.msrb.mxu2 %v233_v18  ;;  %474 = vmatmul.f32.vlgmr.msra.gmra.mxu0 %v890_v6  ;;  %v570_v6 = vld [vmem:[#allocation5 + $0x50] sm:$0xff] }
  0x74   :  { %534 = vmatmul.f32.vlgmr.msrb.gmra.mxu2 %v927_v9  ;;  %493 = vmatpush.msra.mxu1 %v169_v16  ;;  %v569_v9 = vld [vmem:[#allocation5 + $0x48] sm:$0xff] }
  0x75   :  { %552 = vmatpush.msra.mxu2 %v267_v17  ;;  %494 = vmatmul.f32.vlgmr.msra.gmra.mxu1 %v901_v12  ;;  %v567_v12 = vld [vmem:[#allocation5 + $0x38] sm:$0xff] }
  0x76   :  { %596 = vmatpush.msrb.mxu1 %v575_v20  ;;  %616 = vmatpush.msrb.mxu3 %v591_v31  ;;  %v637_v31 = vld [vmem:[%s1030_s5] sm:$0xff] }
  0x77   :  { %553 = vmatpush.msra.mxu2 %v265_v19 }
  0x78   :  { %597 = vmatpush.msrb.mxu1 %v574_v3  ;;  %617 = vmatpush.msrb.mxu3 %v590_v32  ;;  %v652_v3 = vld [vmem:[%s1030_s5 + $0x78] sm:$0xff] }
  0x79   :  { %657 = vmatpush.msrb.mxu0 %v652_v3  ;;  %v685_v32 = vld [vmem:[%s1032_s7 + $0x38] sm:$0xff] }
  0x7a   :  { %598 = vmatpush.msrb.mxu1 %v573_v21  ;;  %618 = vmatpush.msrb.mxu3 %v589_v34  ;;  %v651_v21 = vld [vmem:[%s1030_s5 + $0x70] sm:$0xff]  ;;  %v683_v34 = vld [vmem:[%s1032_s7 + $0x28] sm:$0xff] }
  0x7b   :  { %658 = vmatpush.msrb.mxu0 %v651_v21  ;;  %702 = vmatpush.msrb.mxu2 %v685_v32 }
  0x7c   :  { %734 = vmatmul.msk.f32.vlgmr.msra.gmra.mxu2 %vm274_vm0, %v914_v62  ;;  %599 = vmatpush.msrb.mxu1 %v572_v22  ;;  %v565_v62 = vld [vmem:[#allocation5 + $0x28] sm:$0xff] }
  0x7d   :  { %619 = vmatpush.msrb.mxu3 %v588_v35  ;;  %v650_v22 = vld [vmem:[%s1030_s5 + $0x68] sm:$0xff]  ;;  %703 = vmatpush.msrb.mxu2 %v684_v33  ;;  %v682_v35 = vld [vmem:[%s1032_s7 + $0x20] sm:$0xff] }
  0x7e   :  { %600 = vmatpush.msrb.mxu1 %v571_v23  ;;  %v649_v23 = vld [vmem:[%s1030_s5 + $0x60] sm:$0xff]  ;;  %659 = vmatpush.msrb.mxu0 %v650_v22 }
  0x7f   :  { %620 = vmatpush.msrb.mxu3 %v587_v46  ;;  %704 = vmatpush.msrb.mxu2 %v683_v34  ;;  %v744_v46 = vld [vmem:[%s1031_s6] ss:$0 sm:$0xff] }
  0x80   :  { %601 = vmatpush.msrb.mxu1 %v570_v6  ;;  %v648_v6 = vld [vmem:[%s1030_s5 + $0x58] sm:$0xff]  ;;  %660 = vmatpush.msrb.mxu0 %v649_v23 }
  0x81   :  { %621 = vmatpush.msrb.mxu3 %v586_v48  ;;  %705 = vmatpush.msrb.mxu2 %v682_v35 }
  0x82   :  { %602 = vmatpush.msrb.mxu1 %v569_v9  ;;  %v647_v9 = vld [vmem:[%s1030_s5 + $0x50] sm:$0xff]  ;;  %661 = vmatpush.msrb.mxu0 %v648_v6 }
  0x83   :  { %622 = vmatpush.msrb.mxu3 %v585_v52 }
  0x84   :  { %603 = vmatpush.msrb.mxu1 %v568_v24  ;;  %v646_v24 = vld [vmem:[%s1030_s5 + $0x48] sm:$0xff]  ;;  %662 = vmatpush.msrb.mxu0 %v647_v9 }
  0x85   :  { %623 = vmatpush.msrb.mxu3 %v584_v54 }
  0x86   :  { %604 = vmatpush.msrb.mxu1 %v567_v12  ;;  %v645_v12 = vld [vmem:[%s1030_s5 + $0x40] sm:$0xff]  ;;  %663 = vmatpush.msrb.mxu0 %v646_v24 }
  0x87   :  { %624 = vmatpush.msrb.mxu3 %v583_v56 }
  0x88   :  { %605 = vmatpush.msrb.mxu1 %v566_v25  ;;  %v644_v25 = vld [vmem:[%s1030_s5 + $0x38] sm:$0xff]  ;;  %664 = vmatpush.msrb.mxu0 %v645_v12 }
  0x89   :  { %625 = vmatpush.msrb.mxu3 %v582_v57 }
  0x8a   :  { %606 = vmatpush.msrb.mxu1 %v565_v62  ;;  %v643_v62 = vld [vmem:[%s1030_s5 + $0x30] sm:$0xff]  ;;  %665 = vmatpush.msrb.mxu0 %v644_v25 }
  0x8b   :  { %626 = vmatpush.msrb.mxu3 %v581_v58 }
  0x8c   :  { %607 = vmatpush.msrb.mxu1 %v564_v26  ;;  %v642_v26 = vld [vmem:[%s1030_s5 + $0x28] sm:$0xff]  ;;  %666 = vmatpush.msrb.mxu0 %v643_v62 }
  0x8d   :  { %627 = vmatpush.msrb.mxu3 %v580_v59 }
  0x8e   :  { %608 = vmatpush.msrb.mxu1 %v563_v27  ;;  %v641_v27 = vld [vmem:[%s1030_s5 + $0x20] sm:$0xff]  ;;  %667 = vmatpush.msrb.mxu0 %v642_v26 }
  0x8f   :  { %628 = vmatpush.msrb.mxu3 %v579_v60 }
  0x90   :  { %609 = vmatpush.msrb.mxu1 %v562_v28  ;;  %v640_v28 = vld [vmem:[%s1030_s5 + $0x18] sm:$0xff]  ;;  %668 = vmatpush.msrb.mxu0 %v641_v27 }
  0x91   :  { %629 = vmatpush.msrb.mxu3 %v578_v61 }
  0x92   :  { %610 = vmatpush.msrb.mxu1 %v561_v29  ;;  %669 = vmatpush.msrb.mxu0 %v640_v28  ;;  %v639_v29 = vld [vmem:[%s1030_s5 + $0x10] sm:$0xff] }
  0x93   :  { %630 = vmatpush.msrb.mxu3 %v577_v63 }
  0x94   :  { %611 = vmatpush.msrb.mxu1 %v560_v30  ;;  %670 = vmatpush.msrb.mxu0 %v639_v29  ;;  %v638_v30 = vld [vmem:[%s1030_s5 + $0x8] sm:$0xff] }
  0x95   :  { %631 = vmatpush.msrb.mxu3 %v576_v0 }
  0x96   :  { %671 = vmatpush.msrb.mxu0 %v638_v30 }
  0x98   :  { %672 = vmatpush.msrb.mxu0 %v637_v31 }
  0xb0   :  { %v295_v37 = vpop.f32.mrf.mxu0 }
  0xb1   :  { %v296_v38 = vadd.f32 %v295_v37, %v270_v36  ;;  %v681_v36 = vld [vmem:[%s1032_s7 + $0x18] sm:$0xff]  ;;  %v743_v37 = vld [vmem:[%s1029_s4] ss:$0 sm:$0xff] }
  0xb2   :  { %706 = vmatpush.msrb.mxu2 %v681_v36 }
  0xb4   :  { %v315_v39 = vpop.f32.mrf.mxu1  ;;  %v335_v41 = vpop.f32.mrf.mxu2 }
  0xb5   :  { %v316_v40 = vadd.f32 %v315_v39, %v296_v38 }
  0xb7   :  { %v336_v42 = vadd.f32 %v335_v41, %v316_v40  ;;  %v355_v43 = vpop.f32.mrf.mxu3 }
  0xb9   :  { %v356_v44 = vadd.f32 %v355_v43, %v336_v42  ;;  %v680_v43 = vld [vmem:[%s1032_s7 + $0x10] sm:$0xff] }
  0xba   :  { %707 = vmatpush.msrb.mxu2 %v680_v43 }
  0xcc   :  { %v375_v45 = vpop.f32.mrf.mxu0 }
  0xcd   :  { %v376_v47 = vadd.f32 %v375_v45, %v356_v44  ;;  %v679_v44 = vld [vmem:[%s1032_s7 + $0x8] sm:$0xff]  ;;  %v678_v45 = vld [vmem:[%s1032_s7] sm:$0xff]  ;;  %s722_s7 = sshll.u32 %s1034_s9, 4  ;;  %s723_s7 = int_to_ptr.hbm [resolvable:$true] %s722_s7 }
  0xce   :  { %708 = vmatpush.msrb.mxu2 %v679_v44 }
  0xcf   :  { %v395_v49 = vpop.f32.mrf.mxu1 }
  0xd0   :  { %v396_v50 = vadd.f32 %v395_v49, %v376_v47  ;;  %v415_v51 = vpop.f32.mrf.mxu2  ;;  %709 = vmatpush.msrb.mxu2 %v678_v45 }
  0xd2   :  { %v416_v53 = vadd.f32 %v415_v51, %v396_v50  ;;  %v745_v50 = vld [vmem:[%s1033_s8] ss:$0 sm:$0xff] }
  0xd4   :  { %v558_v55 = vmax.f32 %v416_v53, 0.0 }
  0xd6   :  { %612 = vmatmul.f32.vlgmr.msrb.gmra.mxu1 %v558_v55 }
  0xea   :  { %v435_v2 = vpop.f32.mrf.mxu3 }
  0xeb   :  { %v436_v4 = vadd.f32 %v435_v2, %v271_v1 }
  0xed   :  { %v455_v5 = vpop.f32.mrf.mxu2 }
  0xee   :  { %v456_v7 = vadd.f32 %v455_v5, %v436_v4 }
  0xf0   :  { %v475_v8 = vpop.f32.mrf.mxu0 }
  0xf1   :  { %v476_v11 = vadd.f32 %v475_v8, %v456_v7 }
  0xf2   :  { %v495_v10 = vpop.f32.mrf.mxu1 }
  0xf3   :  { %v496_v13 = vadd.f32 %v495_v10, %v476_v11 }
  0xf4   :  { %v515_v14 = vpop.f32.mrf.mxu3 }
  0xf5   :  { %v516_v18 = vadd.f32 %v515_v14, %v496_v13 }
  0xf7   :  { %v535_v15 = vpop.f32.mrf.mxu2 }
  0xf8   :  { %v536_v16 = vadd.f32 %v535_v15, %v516_v18 }
  0xff   :  { %v555_v17 = vpop.f32.mrf.mxu2 }
 0x100   :  { %v556_v19 = vadd.f32 %v555_v17, %v536_v16 }
 0x102   :  { %v559_v20 = vmax.f32 %v556_v19, 0.0 }
 0x104   :  { %632 = vmatmul.f32.vlgmr.msrb.gmra.mxu3 %v559_v20 }
 0x153   :  { %v613_v38 = vpop.f32.mrf.mxu1 }
 0x154   :  { %v614_v39 = vadd.f32 %v743_v37, %v613_v38 }
 0x187   :  { %v633_v40 = vpop.f32.mrf.mxu3 }
 0x188   :  { %v634_v41 = vadd.f32 %v633_v40, %v614_v39 }
 0x18a   :  { %v636_v42 = vmax.f32 %v634_v41, 0.0 }
 0x18c   :  { %673 = vmatmul.f32.vlgmr.msrb.gmra.mxu0 %v636_v42 }
 0x209   :  { %v674_v47 = vpop.f32.mrf.mxu0 }
 0x20a   :  { %v675_v48 = vadd.f32 %v744_v46, %v674_v47 }
 0x20c   :  { %v677_v49 = vmax.f32 %v675_v48, 0.0 }
 0x20e   :  { %735 = vmatmul.msk.f32.vlgmr.msrb.gmra.mxu2 %vm690_vm1, %v677_v49 }
 0x291   :  { %v711_v51 = vpop.f32.mrf.mxu2 }
 0x292   :  { %v712_v52 = vadd.f32 %v745_v50, %v711_v51 }
 0x294   :  { %714 = vst [vmem:[#allocation7] sm:$0xff] %v712_v52 }
 0x295   :  { %725 = dma.vmem_to_hbm [thread:$0]  %s721_s17, 128, %s723_s7, [#allocation4]  }
 0x296   :  { %822 = dma.done.wait [#allocation4], 128  }
 0x297   :  { %823 = vsyncadd [#allocation4], 4294967168 }
 0x298   :  { %730 = vsyncpa [#allocation3], 1 }
 0x299   :  { %731 = vsyncpa [#allocation6], 1 }
 0x29a   :  { %732 = vsyncpa [#allocation4], 1 }

</bundles_post_ra>
